<compile_context>
chip_gen: v6e
topology: v6e:2x2x1
jax: 0.10.0
libtpu: 0.0.40
codegen_flags: <defaults>
</compile_context>

<pallas_src>
import functools

import jax
import jax.numpy as jnp
from jax.experimental import pallas as pl
from jax.experimental.pallas import tpu as pltpu

EPS = 1e-5

_LANE = 128
_SUBLANE = 8


def _round_up(n, m):
    return ((n + m - 1) // m) * m


def _vmem_capacity_bytes():
    """Physical VMEM of the current chip (per TensorCore), with a safe fallback."""
    try:
        info = pltpu.get_tpu_info()
        for name in ("vmem_capacity_bytes", "vmem_size_bytes", "vmem_bytes"):
            cap = getattr(info, name, None)
            if cap:
                return int(cap)
    except Exception:
        pass
    return 64 * 1024 * 1024  # conservative: v7x per-TC VMEM


def _budgets():
    """(x-block byte cap, scoped vmem_limit_bytes) derived from the chip.

    Accounting: input and output x blocks are each double-buffered by the
    BlockSpec pipeline (4 block-sized buffers) plus f32 upcast temporaries,
    so the per-block cap is vmem_limit // 8 with generous headroom.
    """
    vmem = _vmem_capacity_bytes()
    vmem_limit = min((vmem * 3) // 4, 96 * 1024 * 1024)
    x_block = vmem_limit // 8
    return x_block, vmem_limit


def _pick_tile(n, unit, max_elems):
    """Largest multiple of `unit` dividing `n` that is <= max(max_elems, unit)."""
    if n % unit != 0:
        return n
    cap = min(n, max(int(max_elems), unit))
    best = unit
    m = unit
    while m <= cap:
        if n % m == 0:
            best = m
        m += unit
    return best


# --------------------------------------------------------------------------- #
# Kernels
# --------------------------------------------------------------------------- #
def _repbn_fused_kernel(x_ref, gamma_ref, beta_ref, alpha_ref, o_ref, *, inv_count):
    # x_ref: (Lp, tc) -- full (padded) row extent, one channel tile.
    # Stats + apply fused: 1 HBM read + 1 HBM write of x.
    x = x_ref[...].astype(jnp.float32)
    s = jnp.sum(x, axis=0, keepdims=True)             # (1, tc)
    ss = jnp.sum(x * x, axis=0, keepdims=True)        # (1, tc)
    mean = s * inv_count                              # true row count (padding is zero)
    var = jnp.maximum(ss * inv_count - mean * mean, 0.0)   # biased var (torch BN fwd)
    g_inv = gamma_ref[...] * jax.lax.rsqrt(var + EPS)
    scale = g_inv + alpha_ref[0]                      # BN + alpha*x in one FMA
    shift = beta_ref[...] - g_inv * mean
    # Re-read x for the apply so the f32 upcast above need not stay live across
    # the whole block (keeps effective VMEM ~ input-block-sized for bf16 inputs).
    o_ref[...] = (x_ref[...].astype(jnp.float32) * scale + shift).astype(o_ref.dtype)


def _repbn_stats_kernel(x_ref, sum_ref, sumsq_ref):
    # Grid: (row-split "parallel", channel tiles "parallel", row tiles "arbitrary").
    # sum_ref / sumsq_ref map to the same (1, 1, tc) block across the trailing
    # row axis, so they stay resident in VMEM and act as accumulators.
    x = x_ref[...].astype(jnp.float32)
    s = jnp.sum(x, axis=0, keepdims=True)[None]       # (1, 1, tc)
    ss = jnp.sum(x * x, axis=0, keepdims=True)[None]  # (1, 1, tc)

    @pl.when(pl.program_id(2) == 0)
    def _():
        sum_ref[...] = s
        sumsq_ref[...] = ss

    @pl.when(pl.program_id(2) > 0)
    def _():
        sum_ref[...] = sum_ref[...] + s
        sumsq_ref[...] = sumsq_ref[...] + ss


def _repbn_apply_kernel(x_ref, scale_ref, shift_ref, o_ref):
    # out = scale[c] * x + shift[c]  -- one FMA per element, full-width blocks.
    o_ref[...] = (x_ref[...].astype(jnp.float32) * scale_ref[...]
                  + shift_ref[...]).astype(o_ref.dtype)


# --------------------------------------------------------------------------- #
# Wrapper
# --------------------------------------------------------------------------- #
def repbn(x_btc, gamma, beta, alpha, *, force_two_pass=False, max_block_rows=None):
    """RepBN forward: training-mode BatchNorm1d(C) + alpha * x, x of shape (B, T, C)."""
    B, T, C = x_btc.shape
    L = B * T
    dtype = x_btc.dtype
    itemsize = jnp.dtype(dtype).itemsize

    x_block, vmem_limit = _budgets()

    # Pad channels to a lane multiple and rows to a sublane multiple so all
    # stores are unmasked and lane-dense. Zero padding does not perturb the
    # real-channel stats because mean/var use the true row count L.
    Cp = _round_up(C, _LANE)
    Lp = _round_up(L, _SUBLANE)

    x2 = x_btc.reshape(L, C)          # contiguous reshape, NO transpose
    if (Lp, Cp) != (L, C):
        x2 = jnp.pad(x2, ((0, Lp - L), (0, Cp - C)))

    gamma_row = jnp.pad(gamma.astype(jnp.float32).reshape(1, C), ((0, 0), (0, Cp - C)))
    beta_row = jnp.pad(beta.astype(jnp.float32).reshape(1, C), ((0, 0), (0, Cp - C)))
    alpha_s = jnp.asarray(alpha, jnp.float32).reshape(-1)[:1]   # float / 0-d / (1,) ok

    smem_spec = pl.BlockSpec(memory_space=pltpu.MemorySpace.SMEM)
    inv_count = 1.0 / L

    fused_fits = Lp * _LANE * itemsize <= x_block

    if fused_fits and not force_two_pass:
        # ---- single pass: grid over channel tiles only -> 1 read + 1 write of x.
        tc = _pick_tile(Cp, _LANE, x_block // max(Lp * itemsize, 1))
        # Keep >= 2 steps on the "parallel" axis so both v7x TensorCores stream
        # HBM (harmless elsewhere); impossible only when Cp == 128.
        if tc == Cp and Cp > _LANE:
            tc = _pick_tile(Cp, _LANE, Cp - _LANE)
        nc = Cp // tc
        out2 = pl.pallas_call(
            functools.partial(_repbn_fused_kernel, inv_count=inv_count),
            out_shape=jax.ShapeDtypeStruct((Lp, Cp), dtype),
            grid=(nc,),
            in_specs=[
                pl.BlockSpec((Lp, tc), lambda c: (0, c)),
                pl.BlockSpec((1, tc), lambda c: (0, c)),
                pl.BlockSpec((1, tc), lambda c: (0, c)),
                smem_spec,
            ],
            out_specs=pl.BlockSpec((Lp, tc), lambda c: (0, c)),
            compiler_params=pltpu.CompilerParams(
                dimension_semantics=("parallel",),
                vmem_limit_bytes=vmem_limit),
        )(x2, gamma_row, beta_row, alpha_s)
    else:
        # ---- two passes (large L): 2 reads + 1 write of x total.
        # Pass 1: per-channel partial sums / sum-of-squares.  Prefer full-C
        # blocks (contiguous row DMA); fall back to channel tiles only if a
        # single 8-row full-C slab would blow the block budget.
        if _SUBLANE * Cp * itemsize <= x_block:
            tc = Cp
        else:
            tc = _pick_tile(Cp, _LANE, x_block // (_SUBLANE * itemsize))
        row_budget = max(x_block // max(tc * itemsize, 1), _SUBLANE)
        if max_block_rows is not None:
            row_budget = min(row_budget, max_block_rows)
        tl = _pick_tile(Lp, _SUBLANE, row_budget)
        nc, nl = Cp // tc, Lp // tl

        # Leading 2-way row-split "parallel" axis keeps both v7x cores reading x
        # during the stats sweep even when nc == 1; partial sums combined below.
        rsplit = 2 if (nc == 1 and nl >= 2 and nl % 2 == 0) else 1
        nl_per = nl // rsplit

        x1_spec = pl.BlockSpec((tl, tc), lambda r, c, l, _n=nl_per: (r * _n + l, c))
        stat_spec = pl.BlockSpec((1, 1, tc), lambda r, c, l: (r, 0, c))
        stat_shape = jax.ShapeDtypeStruct((rsplit, 1, Cp), jnp.float32)

        psum, psumsq = pl.pallas_call(
            _repbn_stats_kernel,
            out_shape=(stat_shape, stat_shape),
            grid=(rsplit, nc, nl_per),
            in_specs=[x1_spec],
            out_specs=(stat_spec, stat_spec),
            compiler_params=pltpu.CompilerParams(
                dimension_semantics=("parallel", "parallel", "arbitrary"),
                vmem_limit_bytes=vmem_limit),
        )(x2)

        # Tiny (1, Cp) math in plain JAX: combine row-split partials and fold
        # BN + alpha*x into a single per-channel scale/shift FMA.
        # TODO(synk): E[x^2]-mean^2 in f32 can cancel for |mean| >> std; switch
        # to a shifted two-pass variance if inputs can be heavily offset.
        sum_c = jnp.sum(psum, axis=0)        # (1, Cp)
        sumsq_c = jnp.sum(psumsq, axis=0)    # (1, Cp)
        mean = sum_c * inv_count
        var = jnp.maximum(sumsq_c * inv_count - mean * mean, 0.0)
        g_inv = gamma_row * jax.lax.rsqrt(var + EPS)
        scale = g_inv + alpha_s.reshape(1, 1)
        shift = beta_row - g_inv * mean

        # Pass 2: out = scale * x + shift.  Full-C blocks (contiguous HBM read
        # and lane-dense unmasked writes), rows tiled, both grid axes parallel.
        tc2 = Cp if _SUBLANE * Cp * itemsize <= x_block else tc
        row_budget2 = max(x_block // max(tc2 * itemsize, 1), _SUBLANE)
        if max_block_rows is not None:
            row_budget2 = min(row_budget2, max_block_rows)
        tl2 = _pick_tile(Lp, _SUBLANE, row_budget2)
        nc2, nl2 = Cp // tc2, Lp // tl2

        x2_spec = pl.BlockSpec((tl2, tc2), lambda c, l: (l, c))
        prm_spec = pl.BlockSpec((1, tc2), lambda c, l: (0, c))
        out2 = pl.pallas_call(
            _repbn_apply_kernel,
            out_shape=jax.ShapeDtypeStruct((Lp, Cp), dtype),
            grid=(nc2, nl2),
            in_specs=[x2_spec, prm_spec, prm_spec],
            out_specs=x2_spec,
            compiler_params=pltpu.CompilerParams(
                dimension_semantics=("parallel", "parallel"),
                vmem_limit_bytes=vmem_limit),
        )(x2, scale, shift)

    if (Lp, Cp) != (L, C):
        out2 = out2[:L, :C]
    return out2.reshape(B, T, C)


# --------------------------------------------------------------------------- #
# Pure-JAX reference (training-mode BatchNorm1d over channels + alpha * x)
# --------------------------------------------------------------------------- #
def repbn_ref(x_btc, gamma, beta, alpha):
    alpha = jnp.asarray(alpha, jnp.float32).reshape(-1)[:1]
    mean = jnp.mean(x_btc, axis=(0, 1), keepdims=True)
    var = jnp.mean((x_btc - mean) ** 2, axis=(0, 1), keepdims=True)
    bn = (gamma.reshape(1, 1, -1) * (x_btc - mean) * jax.lax.rsqrt(var + EPS)
          + beta.reshape(1, 1, -1))
    return bn + alpha.reshape(1, 1, 1) * x_btc


if __name__ == "__main__":
    key = jax.random.PRNGKey(0)
    kx, kg, kb = jax.random.split(key, 3)

    # x is (batch, tokens, channels), as the module's forward (transpose + BN1d) implies.
    B, T, C = 2, 16, 32
    x = jax.random.normal(kx, (B, T, C), dtype=jnp.float32)

    # torch init is gamma=1, beta=0, alpha=1; perturb gamma/beta so the affine
    # path is genuinely exercised.
    gamma = 1.0 + 0.1 * jax.random.normal(kg, (C,), dtype=jnp.float32)
    beta = 0.1 * jax.random.normal(kb, (C,), dtype=jnp.float32)
    alpha = jnp.ones((1,), dtype=jnp.float32)

    ref = repbn_ref(x, gamma, beta, alpha)

    # Fused single-pass path (what this small shape selects).
    out = jax.block_until_ready(repbn(x, gamma, beta, alpha))
    assert out.shape == (B, T, C)
    assert jnp.allclose(out, ref, atol=1e-4, rtol=1e-4)

    # Force the tiled two-pass path (what a large B*T would select) with small
    # row tiles so the row-split parallel stats pass (grid (2, 1, 2), both
    # accumulator branches) and the multi-tile apply pass are exercised.
    out2 = jax.block_until_ready(
        repbn(x, gamma, beta, alpha, force_two_pass=True, max_block_rows=8))
    assert jnp.allclose(out2, ref, atol=1e-4, rtol=1e-4)

    # Non-aligned shape (L=15 not a multiple of 8, C=40 not a multiple of 128)
    # plus a Python-float alpha: exercises padding + API robustness.
    B2, T2, C2 = 3, 5, 40
    x3 = jax.random.normal(jax.random.PRNGKey(1), (B2, T2, C2), dtype=jnp.float32)
    g3 = jnp.linspace(0.5, 1.5, C2, dtype=jnp.float32)
    b3 = jnp.linspace(-0.2, 0.2, C2, dtype=jnp.float32)
    out3 = jax.block_until_ready(repbn(x3, g3, b3, 0.5))
    ref3 = repbn_ref(x3, g3, b3, 0.5)
    assert jnp.allclose(out3, ref3, atol=1e-4, rtol=1e-4)

    print("KERNEL_OK")
</pallas_src>

<mosaic_0001>
module attributes {stable_mosaic.version = 11 : i64} {
  func.func @_repbn_fused_kernel(%arg0: i32, %arg1: memref<32x128xf32, #tpu.memory_space<vmem>>, %arg2: memref<1x128xf32, #tpu.memory_space<vmem>>, %arg3: memref<1x128xf32, #tpu.memory_space<vmem>>, %arg4: memref<1xf32, #tpu.memory_space<smem>>, %arg5: memref<32x128xf32, #tpu.memory_space<vmem>>) attributes {dimension_semantics = [#tpu.dimension_semantics<parallel>], iteration_bounds = array<i64: 1>, scalar_prefetch = 0 : i64, scratch_operands = 0 : i64, tpu.core_type = #tpu.core_type<tc>, window_params = [{transform_indices = @transform_0, window_bounds = array<i64: 32, 128>}, {transform_indices = @transform_1, window_bounds = array<i64: 1, 128>}, {transform_indices = @transform_2, window_bounds = array<i64: 1, 128>}, {transform_indices = @transform_3, window_bounds = array<i64: 1>}, {transform_indices = @transform_4, window_bounds = array<i64: 32, 128>}]} {
    %c0 = arith.constant 0 : index
    %c0_0 = arith.constant 0 : index
    %0 = vector.load %arg1[%c0, %c0_0] : memref<32x128xf32, #tpu.memory_space<vmem>>, vector<32x128xf32>
    %cst = arith.constant dense<0.000000e+00> : vector<128xf32>
    %1 = vector.multi_reduction <add>, %0, %cst [0] : vector<32x128xf32> to vector<128xf32>
    %2 = vector.shape_cast %1 : vector<128xf32> to vector<1x128xf32>
    %3 = arith.mulf %0, %0 : vector<32x128xf32>
    %cst_1 = arith.constant dense<0.000000e+00> : vector<128xf32>
    %4 = vector.multi_reduction <add>, %3, %cst_1 [0] : vector<32x128xf32> to vector<128xf32>
    %5 = vector.shape_cast %4 : vector<128xf32> to vector<1x128xf32>
    %cst_2 = arith.constant 3.125000e-02 : f32
    %6 = vector.broadcast %cst_2 : f32 to vector<1x128xf32>
    %7 = arith.mulf %2, %6 : vector<1x128xf32>
    %cst_3 = arith.constant 3.125000e-02 : f32
    %8 = vector.broadcast %cst_3 : f32 to vector<1x128xf32>
    %9 = arith.mulf %5, %8 : vector<1x128xf32>
    %10 = arith.mulf %7, %7 : vector<1x128xf32>
    %11 = arith.subf %9, %10 : vector<1x128xf32>
    %cst_4 = arith.constant 0.000000e+00 : f32
    %12 = vector.broadcast %cst_4 : f32 to vector<1x128xf32>
    %13 = arith.maximumf %11, %12 : vector<1x128xf32>
    %c0_5 = arith.constant 0 : index
    %c0_6 = arith.constant 0 : index
    %14 = vector.load %arg2[%c0_5, %c0_6] : memref<1x128xf32, #tpu.memory_space<vmem>>, vector<1x128xf32>
    %cst_7 = arith.constant 9.99999974E-6 : f32
    %15 = vector.broadcast %cst_7 : f32 to vector<1x128xf32>
    %16 = arith.addf %13, %15 : vector<1x128xf32>
    %17 = math.rsqrt %16 : vector<1x128xf32>
    %18 = arith.mulf %14, %17 : vector<1x128xf32>
    %c0_8 = arith.constant 0 : index
    %19 = memref.load %arg4[%c0_8] : memref<1xf32, #tpu.memory_space<smem>>
    %20 = vector.broadcast %19 : f32 to vector<1x128xf32>
    %21 = arith.addf %18, %20 : vector<1x128xf32>
    %c0_9 = arith.constant 0 : index
    %c0_10 = arith.constant 0 : index
    %22 = vector.load %arg3[%c0_9, %c0_10] : memref<1x128xf32, #tpu.memory_space<vmem>>, vector<1x128xf32>
    %23 = arith.mulf %18, %7 : vector<1x128xf32>
    %24 = arith.subf %22, %23 : vector<1x128xf32>
    %c0_11 = arith.constant 0 : index
    %c0_12 = arith.constant 0 : index
    %25 = vector.load %arg1[%c0_11, %c0_12] : memref<32x128xf32, #tpu.memory_space<vmem>>, vector<32x128xf32>
    %26 = vector.broadcast %21 : vector<1x128xf32> to vector<32x128xf32>
    %27 = arith.mulf %25, %26 : vector<32x128xf32>
    %28 = vector.broadcast %24 : vector<1x128xf32> to vector<32x128xf32>
    %29 = arith.addf %27, %28 : vector<32x128xf32>
    %c0_13 = arith.constant 0 : index
    %c0_14 = arith.constant 0 : index
    %30 = vector.load %arg5[%c0_13, %c0_14] : memref<32x128xf32, #tpu.memory_space<vmem>>, vector<32x128xf32>
    tpu.vector_store %arg5[%c0_13, %c0_14], %29 {strides = array<i32>} : memref<32x128xf32, #tpu.memory_space<vmem>>, vector<32x128xf32>,
    return
  }
  func.func @transform_0(%arg0: i32) -> (i32, i32) {
    %c0_i32 = arith.constant 0 : i32
    %c0_i32_0 = arith.constant 0 : i32
    return %c0_i32, %arg0 : i32, i32
  }
  func.func @transform_1(%arg0: i32) -> (i32, i32) {
    %c0_i32 = arith.constant 0 : i32
    %c0_i32_0 = arith.constant 0 : i32
    return %c0_i32, %arg0 : i32, i32
  }
  func.func @transform_2(%arg0: i32) -> (i32, i32) {
    %c0_i32 = arith.constant 0 : i32
    %c0_i32_0 = arith.constant 0 : i32
    return %c0_i32, %arg0 : i32, i32
  }
  func.func @transform_3(%arg0: i32) -> i32 {
    %c0_i32 = arith.constant 0 : i32
    %c0_i32_0 = arith.constant 0 : i32
    return %c0_i32 : i32
  }
  func.func @transform_4(%arg0: i32) -> (i32, i32) {
    %c0_i32 = arith.constant 0 : i32
    %c0_i32_0 = arith.constant 0 : i32
    return %c0_i32, %arg0 : i32, i32
  }
}

</mosaic_0001>

<bundles_post_ra>
// kernel: tpu_custom_call.1
= control target key start
LH: loop header
LB: loop body
LE: loop exit
PB: predicated region body
PF: predicated region fallthrough
CT: control target
= control target key end

     0   :  { %10 = vsyncpa [#allocation4], 0  ;;  %s215_s0 = inlined_call_operand.hbm [shape: f32[32,128], index: 0, kind: input, shape index: {}]   ;;  %s216_s1 = inlined_call_operand.vmem [shape: f32[1,128], index: 1, kind: input, shape index: {}]   ;;  %s217_s2 = inlined_call_operand.vmem [shape: f32[1,128], index: 2, kind: input, shape index: {}]   ;;  %s218_s3 = inlined_call_operand.<no memory space> [shape: f32[1], index: 3, kind: input, shape index: {}]   ;;  %s219_s4 = inlined_call_operand.hbm [shape: f32[32,128], index: 4, kind: output, shape index: {}]  }
   0x1   :  { %11 = vsyncpa [#allocation5], 0  ;;  %s165_s15 = smov [#allocation3]  }
   0x2   :  { %s17_s16 = sshll.u32 %s165_s15, 4  ;;  %s18_s16 = int_to_ptr.vmem [resolvable:$true] %s17_s16 }
   0x3   :  { %s129_s17 = scalar_lea.vmem %s18_s16, 512  ;;  %p134_p1 = scmp.lt.s32.totalorder %s18_s16, %s18_s16 }
   0x4   :  { %p130_p0 = scmp.ne.s32.totalorder %s18_s16, %s129_s17  ;;  %p135_p2 = scmp.lt.s32.totalorder %s129_s17, %s129_s17 }
   0x6   :  { %p136_p3 = por %p135_p2, %p134_p1 }
   0x8   :  { %p137_p4 = pnand %p136_p3, %p130_p0 }
   0xa   :  { %140 = shalt.err (!%p137_p4)
}
   0xb   :  { %s166_s18 = smov 128   ;;  %s167_s19 = smov 8  }
   0xc   :  { %23 = dma.hbm_to_vmem [thread:$0]  %s215_s0, 512, %s18_s16, [#allocation4], %s166_s18, %s166_s18, %s167_s19  }
   0xd   :  { %161 = dma.done.wait [#allocation4], 512  }
   0xe   :  { %162 = vsyncadd [#allocation4], 4294966784  ;;  %v33_v0 = vld [vmem:[#allocation3] sm:$0xff]  ;;  %v34_v1 = vld [vmem:[#allocation3 + $0x8] sm:$0xff]  ;;  %v75_v32 = vlaneseq  ;;  %v69_v36 = vstv %s218_s3 }
   0xf   :  { %v35_v2 = vld [vmem:[#allocation3 + $0x10] sm:$0xff]  ;;  %v36_v3 = vld [vmem:[#allocation3 + $0x18] sm:$0xff]  ;;  %v37_v4 = vadd.f32 %v34_v1, %v33_v0  ;;  %v46_v5 = vmul.f32 %v33_v0, %v33_v0  ;;  %v47_v6 = vmul.f32 %v34_v1, %v34_v1  ;;  %v64_v34 = vld [vmem:[%s216_s1] sm:$0x1]  ;;  %s168_s1 = smov [#allocation6]  }
  0x10   :  { %v48_v7 = vmul.f32 %v35_v2, %v35_v2  ;;  %v49_v9 = vmul.f32 %v36_v3, %v36_v3  ;;  %v76_v33 = vshrl.u32 %v75_v32, 7  ;;  %v71_v39 = vld [vmem:[%s217_s2] sm:$0x1]  ;;  %s103_s27 = sshll.u32 %s168_s1, 4  ;;  %s104_s27 = int_to_ptr.vmem [resolvable:$true] %s103_s27 }
  0x11   :  { %v38_v8 = vadd.f32 %v37_v4, %v35_v2  ;;  %v50_v10 = vadd.f32 %v47_v6, %v46_v5  ;;  %s141_s2 = scalar_lea.vmem %s104_s27, 512  ;;  %p146_p6 = scmp.lt.s32.totalorder %s104_s27, %s104_s27 }
  0x12   :  { %v77_v38 = vsub.s32 0, %v76_v33  ;;  %p142_p5 = scmp.ne.s32.totalorder %s104_s27, %s141_s2  ;;  %p147_p7 = scmp.lt.s32.totalorder %s141_s2, %s141_s2 }
  0x13   :  { %v39_v11 = vadd.f32 %v38_v8, %v36_v3  ;;  %v51_v12 = vadd.f32 %v50_v10, %v48_v7 }
  0x14   :  { %p148_p8 = por %p147_p7, %p146_p6 }
  0x15   :  { %v40_v13 = vrot.slane %v39_v11, 4  ;;  %v52_v14 = vadd.f32 %v51_v12, %v49_v9 }
  0x16   :  { %p149_p9 = pnand %p148_p8, %p142_p5 }
  0x17   :  { %v41_v15 = vadd.f32 %v40_v13, %v39_v11  ;;  %v53_v16 = vrot.slane %v52_v14, 4 }
  0x19   :  { %v42_v17 = vrot.slane %v41_v15, 2  ;;  %v54_v18 = vadd.f32 %v53_v16, %v52_v14 }
  0x1b   :  { %v43_v19 = vadd.f32 %v42_v17, %v41_v15  ;;  %v55_v20 = vrot.slane %v54_v18, 2 }
  0x1d   :  { %v44_v21 = vrot.slane %v43_v19, 1  ;;  %v56_v22 = vadd.f32 %v55_v20, %v54_v18 }
  0x1f   :  { %v45_v23 = vadd.f32 %v44_v21, %v43_v19  ;;  %v57_v24 = vrot.slane %v56_v22, 1 }
  0x21   :  { %v58_v25 = vadd.f32 %v57_v24, %v56_v22  ;;  %v59_v26 = vmul.f32 0.03125, %v45_v23 }
  0x23   :  { %v60_v27 = vmul.f32 0.03125, %v58_v25  ;;  %v61_v28 = vmul.f32 %v59_v26, %v59_v26 }
  0x25   :  { %v62_v29 = vsub.f32 %v60_v27, %v61_v28 }
  0x27   :  { %v63_v30 = vmax.f32 %v62_v29, 0.0 }
  0x29   :  { %v65_v31 = vadd.f32 1e-05, %v63_v30 }
  0x2b   :  { %119 = vrsqrt.f32 %v65_v31 }
  0x38   :  { %v120_v35 = vpop.eup %119 }
  0x39   :  { %v67_v37 = vmul.f32 %v120_v35, %v64_v34 }
  0x3b   :  { %v70_v40 = vadd.f32 %v69_v36, %v67_v37  ;;  %v72_v41 = vmul.f32 %v67_v37, %v59_v26 }
  0x3d   :  { %v73_v42 = vsub.f32 %v71_v39, %v72_v41  ;;  %v78_v43 = vrot.slane %v70_v40, %v77_v38 }
  0x3f   :  { %v80_v44 = vmul.f32 %v78_v43, %v33_v0  ;;  %v88_v45 = vrot.slane %v73_v42, %v77_v38  ;;  %v81_v46 = vmul.f32 %v78_v43, %v34_v1  ;;  %v82_v47 = vmul.f32 %v78_v43, %v35_v2 }
  0x40   :  { %v83_v48 = vmul.f32 %v78_v43, %v36_v3 }
  0x41   :  { %v90_v49 = vadd.f32 %v88_v45, %v80_v44  ;;  %v91_v50 = vadd.f32 %v88_v45, %v81_v46  ;;  %v92_v51 = vadd.f32 %v88_v45, %v82_v47 }
  0x42   :  { %v93_v52 = vadd.f32 %v88_v45, %v83_v48 }
  0x43   :  { %94 = vst [vmem:[#allocation6] sm:$0xff] %v90_v49  ;;  %95 = vst [vmem:[#allocation6 + $0x8] sm:$0xff] %v91_v50 }
  0x44   :  { %96 = vst [vmem:[#allocation6 + $0x10] sm:$0xff] %v92_v51  ;;  %97 = vst [vmem:[#allocation6 + $0x18] sm:$0xff] %v93_v52 }
  0x45   :  { %152 = shalt.err (!%p149_p9)
}
  0x46   :  { %109 = dma.vmem_to_hbm [thread:$0]  %s104_s27, 512, %s219_s4, [#allocation5], %s166_s18, %s166_s18, %s167_s19  }
  0x47   :  { %163 = dma.done.wait [#allocation5], 512  }
  0x48   :  { %164 = vsyncadd [#allocation5], 4294966784 }
  0x49   :  { %113 = vsyncpa [#allocation4], 1 }
  0x4a   :  { %114 = vsyncpa [#allocation5], 1 }

</bundles_post_ra>
